<compile_context>
chip_gen: v7x
topology: tpu7x:2x2x1
jax: 0.10.0
libtpu: 0.0.40
codegen_flags: <defaults>
</compile_context>

<pallas_src>
import functools

import jax
import jax.numpy as jnp
from jax.experimental import pallas as pl
from jax.experimental.pallas import tpu as pltpu


def _input_norm_kernel(x_ref, xn_ref, mean_ref, std_ref, *, eps):
    # x_ref: (tb, S, td) tile — the full reduction axis is resident.
    x = x_ref[...].astype(jnp.float32)
    n = x.shape[1]

    mean = jnp.sum(x, axis=1, keepdims=True) * (1.0 / n)            # (tb, 1, td)
    diff = x - mean
    sq_sum = jnp.sum(diff * diff, axis=1, keepdims=True)            # (tb, 1, td)
    if n > 1:
        var = sq_sum * (1.0 / (n - 1))   # torch.std default: unbiased (ddof=1)
    else:
        var = sq_sum * jnp.float32(jnp.nan)  # torch.std with N=1 -> NaN
    std = jnp.sqrt(var)

    # One divide per column (EUP/VPU), then S cheap multiplies per column.
    inv = 1.0 / (std + eps)
    xn_ref[...] = (diff * inv).astype(xn_ref.dtype)
    mean_ref[...] = mean.astype(mean_ref.dtype)
    std_ref[...] = std.astype(std_ref.dtype)


def _divisors_desc(n):
    return [d for d in range(n, 0, -1) if n % d == 0]


def _pick_tiles(B, S, D):
    """Largest lane-dense tiles keeping the f32 x-tile around ~1 MiB."""
    budget_elems = (1024 * 1024) // 4  # ~1 MiB of f32 per x tile
    if D % 128 == 0:
        td_cands = [d for d in _divisors_desc(D) if d % 128 == 0]
    else:
        td_cands = [D]  # small / odd D: take the full extent
    td = td_cands[-1]
    for c in td_cands:  # prefer the widest lane tile that fits
        if S * c <= budget_elems:
            td = c
            break
    tb_cap = max(1, budget_elems // max(1, S * td))
    tb = next(d for d in _divisors_desc(B) if d <= tb_cap)
    return tb, td


def input_norm(x, *, eps=1e-6, tb=None, td=None):
    """x: (B, S, D). Returns (x_norm (B,S,D), mean (B,1,D), std (B,1,D))."""
    B, S, D = x.shape
    auto_tb, auto_td = _pick_tiles(B, S, D)
    tb = auto_tb if tb is None else min(tb, B)
    td = auto_td if td is None else min(td, D)
    assert B % tb == 0, "batch must be divisible by the batch tile"
    assert D % td == 0, "feature dim must be divisible by the lane tile"

    kernel = functools.partial(_input_norm_kernel, eps=eps)

    xn, mean, std = pl.pallas_call(
        kernel,
        out_shape=(
            jax.ShapeDtypeStruct((B, S, D), x.dtype),
            jax.ShapeDtypeStruct((B, 1, D), x.dtype),
            jax.ShapeDtypeStruct((B, 1, D), x.dtype),
        ),
        grid_spec=pltpu.PrefetchScalarGridSpec(
            num_scalar_prefetch=0,
            grid=(B // tb, D // td),
            in_specs=[
                pl.BlockSpec((tb, S, td), lambda i, j: (i, 0, j)),
            ],
            out_specs=(
                pl.BlockSpec((tb, S, td), lambda i, j: (i, 0, j)),
                pl.BlockSpec((tb, 1, td), lambda i, j: (i, 0, j)),
                pl.BlockSpec((tb, 1, td), lambda i, j: (i, 0, j)),
            ),
        ),
        compiler_params=pltpu.CompilerParams(
            dimension_semantics=("parallel", "parallel"),
            vmem_limit_bytes=32 * 1024 * 1024,
        ),
    )(x)
    return xn, mean, std


if __name__ == "__main__":
    key = jax.random.PRNGKey(0)
    B, S, D = 4, 16, 256          # small shapes; D is a multiple of 128 (lane-dense)
    eps = 1e-6

    x = jax.random.normal(key, (B, S, D), jnp.float32)

    xn, mean, std = input_norm(x, eps=eps)
    jax.block_until_ready((xn, mean, std))

    # Pure-JAX reference (torch.std default is unbiased -> ddof=1).
    mean_ref = x.mean(axis=1, keepdims=True)
    std_ref = x.std(axis=1, keepdims=True, ddof=1)
    xn_ref = (x - mean_ref) / (std_ref + eps)

    assert xn.shape == (B, S, D)
    assert mean.shape == (B, 1, D)
    assert std.shape == (B, 1, D)
    assert jnp.allclose(mean, mean_ref, atol=1e-5, rtol=1e-5)
    assert jnp.allclose(std, std_ref, atol=1e-5, rtol=1e-5)
    assert jnp.allclose(xn, xn_ref, atol=1e-5, rtol=1e-5)

    print("KERNEL_OK")
</pallas_src>

<mosaic_0001>
module attributes {stable_mosaic.version = 11 : i64} {
  func.func @_input_norm_kernel(%arg0: i32, %arg1: i32, %arg2: memref<4x16x256xf32, #tpu.memory_space<vmem>>, %arg3: memref<4x16x256xf32, #tpu.memory_space<vmem>>, %arg4: memref<4x1x256xf32, #tpu.memory_space<vmem>>, %arg5: memref<4x1x256xf32, #tpu.memory_space<vmem>>) attributes {dimension_semantics = [#tpu.dimension_semantics<parallel>, #tpu.dimension_semantics<parallel>], iteration_bounds = array<i64: 1, 1>, scalar_prefetch = 0 : i64, scratch_operands = 0 : i64, tpu.core_type = #tpu.core_type<tc>, window_params = [{transform_indices = @transform_0, window_bounds = array<i64: 4, 16, 256>}, {transform_indices = @transform_1, window_bounds = array<i64: 4, 16, 256>}, {transform_indices = @transform_2, window_bounds = array<i64: 4, 1, 256>}, {transform_indices = @transform_3, window_bounds = array<i64: 4, 1, 256>}]} {
    %c0 = arith.constant 0 : index
    %c0_0 = arith.constant 0 : index
    %c0_1 = arith.constant 0 : index
    %0 = vector.load %arg2[%c0, %c0_0, %c0_1] : memref<4x16x256xf32, #tpu.memory_space<vmem>>, vector<4x16x256xf32>
    %cst = arith.constant dense<0.000000e+00> : vector<4x256xf32>
    %1 = vector.multi_reduction <add>, %0, %cst [1] : vector<4x16x256xf32> to vector<4x256xf32>
    %2 = vector.shape_cast %1 : vector<4x256xf32> to vector<4x1x256xf32>
    %cst_2 = arith.constant 6.250000e-02 : f32
    %3 = vector.broadcast %cst_2 : f32 to vector<4x1x256xf32>
    %4 = arith.mulf %2, %3 : vector<4x1x256xf32>
    %5 = vector.broadcast %4 : vector<4x1x256xf32> to vector<4x16x256xf32>
    %6 = arith.subf %0, %5 : vector<4x16x256xf32>
    %7 = arith.mulf %6, %6 : vector<4x16x256xf32>
    %cst_3 = arith.constant dense<0.000000e+00> : vector<4x256xf32>
    %8 = vector.multi_reduction <add>, %7, %cst_3 [1] : vector<4x16x256xf32> to vector<4x256xf32>
    %9 = vector.shape_cast %8 : vector<4x256xf32> to vector<4x1x256xf32>
    %cst_4 = arith.constant 0.0666666701 : f32
    %10 = vector.broadcast %cst_4 : f32 to vector<4x1x256xf32>
    %11 = arith.mulf %9, %10 : vector<4x1x256xf32>
    %12 = math.sqrt %11 : vector<4x1x256xf32>
    %cst_5 = arith.constant 9.99999997E-7 : f32
    %13 = vector.broadcast %cst_5 : f32 to vector<4x1x256xf32>
    %14 = arith.addf %12, %13 : vector<4x1x256xf32>
    %cst_6 = arith.constant 1.000000e+00 : f32
    %15 = vector.broadcast %cst_6 : f32 to vector<4x1x256xf32>
    %16 = arith.divf %15, %14 : vector<4x1x256xf32>
    %17 = vector.broadcast %16 : vector<4x1x256xf32> to vector<4x16x256xf32>
    %18 = arith.mulf %6, %17 : vector<4x16x256xf32>
    %c0_7 = arith.constant 0 : index
    %c0_8 = arith.constant 0 : index
    %c0_9 = arith.constant 0 : index
    %19 = vector.load %arg3[%c0_7, %c0_8, %c0_9] : memref<4x16x256xf32, #tpu.memory_space<vmem>>, vector<4x16x256xf32>
    tpu.vector_store %arg3[%c0_7, %c0_8, %c0_9], %18 {strides = array<i32>} : memref<4x16x256xf32, #tpu.memory_space<vmem>>, vector<4x16x256xf32>,
    %c0_10 = arith.constant 0 : index
    %c0_11 = arith.constant 0 : index
    %c0_12 = arith.constant 0 : index
    %20 = vector.load %arg4[%c0_10, %c0_11, %c0_12] : memref<4x1x256xf32, #tpu.memory_space<vmem>>, vector<4x1x256xf32>
    tpu.vector_store %arg4[%c0_10, %c0_11, %c0_12], %4 {strides = array<i32>} : memref<4x1x256xf32, #tpu.memory_space<vmem>>, vector<4x1x256xf32>,
    %c0_13 = arith.constant 0 : index
    %c0_14 = arith.constant 0 : index
    %c0_15 = arith.constant 0 : index
    %21 = vector.load %arg5[%c0_13, %c0_14, %c0_15] : memref<4x1x256xf32, #tpu.memory_space<vmem>>, vector<4x1x256xf32>
    tpu.vector_store %arg5[%c0_13, %c0_14, %c0_15], %12 {strides = array<i32>} : memref<4x1x256xf32, #tpu.memory_space<vmem>>, vector<4x1x256xf32>,
    return
  }
  func.func @transform_0(%arg0: i32, %arg1: i32) -> (i32, i32, i32) {
    %c0_i32 = arith.constant 0 : i32
    %c0_i32_0 = arith.constant 0 : i32
    return %arg0, %c0_i32, %arg1 : i32, i32, i32
  }
  func.func @transform_1(%arg0: i32, %arg1: i32) -> (i32, i32, i32) {
    %c0_i32 = arith.constant 0 : i32
    %c0_i32_0 = arith.constant 0 : i32
    return %arg0, %c0_i32, %arg1 : i32, i32, i32
  }
  func.func @transform_2(%arg0: i32, %arg1: i32) -> (i32, i32, i32) {
    %c0_i32 = arith.constant 0 : i32
    %c0_i32_0 = arith.constant 0 : i32
    return %arg0, %c0_i32, %arg1 : i32, i32, i32
  }
  func.func @transform_3(%arg0: i32, %arg1: i32) -> (i32, i32, i32) {
    %c0_i32 = arith.constant 0 : i32
    %c0_i32_0 = arith.constant 0 : i32
    return %arg0, %c0_i32, %arg1 : i32, i32, i32
  }
}

</mosaic_0001>

<bundles_post_ra>
// kernel: tpu_custom_call.1
= control target key start
LH: loop header
LB: loop body
LE: loop exit
PB: predicated region body
PF: predicated region fallthrough
CT: control target
= control target key end

     0   :  { %9 = vsyncpa [#allocation3], 0  ;;  %s989_s0 = inlined_call_operand.hbm [shape: f32[4,16,256], index: 0, kind: input, shape index: {}]   ;;  %s990_s1 = inlined_call_operand.hbm [shape: f32[4,16,256], index: 1, kind: output, shape index: {0}]   ;;  %s991_s2 = inlined_call_operand.hbm [shape: f32[4,1,256], index: 2, kind: output, shape index: {1}]   ;;  %s992_s3 = inlined_call_operand.hbm [shape: f32[4,1,256], index: 3, kind: output, shape index: {2}]  }
   0x1   :  { %10 = vsyncpa [#allocation4], 0 }
   0x2   :  { %11 = vsyncpa [#allocation7], 0  ;;  %s654_s12 = smov [#allocation2]   ;;  %s560_s16 = scalar_lea.hbm %s989_s0, 2048 }
   0x3   :  { %s17_s13 = sshll.u32 %s654_s12, 4  ;;  %p561_p0 = scmp.ne.s32.totalorder %s989_s0, %s560_s16  ;;  %s18_s13 = int_to_ptr.vmem [resolvable:$true] %s17_s13 }
   0x4   :  { %p564_p1 = scmp.lt.u32.totalorder %s560_s16, %s989_s0 }
   0x6   :  { %p566_p2 = pnand %p564_p1, %p561_p0 }
   0x8   :  { %569 = shalt.err (!%p566_p2)
}
   0x9   :  { %s570_s21 = scalar_lea.vmem %s18_s13, 2048  ;;  %p575_p4 = scmp.lt.s32.totalorder %s18_s13, %s18_s13 }
   0xa   :  { %p571_p3 = scmp.ne.s32.totalorder %s18_s13, %s570_s21  ;;  %p576_p5 = scmp.lt.s32.totalorder %s570_s21, %s570_s21 }
   0xc   :  { %p577_p6 = por %p576_p5, %p575_p4 }
   0xe   :  { %p578_p7 = pnand %p577_p6, %p571_p3 }
  0x10   :  { %581 = shalt.err (!%p578_p7)
}
  0x11   :  { %s655_s22 = smov 256   ;;  %s656_s23 = smov 16  }
  0x12   :  { %23 = dma.hbm_to_vmem [thread:$0]  %s989_s0, 2048, %s18_s13, [#allocation3], %s655_s22, %s655_s22, %s656_s23  }
  0x13   :  { %648 = dma.done.wait [#allocation3], 2048  }
  0x14   :  { %649 = vsyncadd [#allocation3], 4294965248  ;;  %v657_v0 = vmov 1966171168   ;;  %v327_v2 = vlaneseq  ;;  %v698_v3 = vld [vmem:[#allocation2] sm:$0xff]  ;;  %v700_v4 = vld [vmem:[#allocation2 + $0x8] sm:$0xff] }
  0x15   :  { %v325_v1 = vunpack.c.l.s4 %v657_v0  ;;  %v702_v5 = vld [vmem:[#allocation2 + $0x10] sm:$0xff]  ;;  %v704_v8 = vld [vmem:[#allocation2 + $0x18] sm:$0xff]  ;;  %v708_v10 = vld [vmem:[#allocation2 + $0x20] sm:$0xff]  ;;  %s658_s0 = smov [#allocation6]  }
  0x16   :  { %v328_v7 = vshrl.u32 %v327_v2, 7  ;;  %v43_v9 = vadd.f32 %v702_v5, %v698_v3  ;;  %v710_v11 = vld [vmem:[#allocation2 + $0x28] sm:$0xff]  ;;  %v50_v12 = vadd.f32 %v704_v8, %v700_v4  ;;  %v714_v13 = vld [vmem:[#allocation2 + $0x30] sm:$0xff]  ;;  %v716_v14 = vld [vmem:[#allocation2 + $0x38] sm:$0xff]  ;;  %vm748_vm0 = vcmp.lt.s32.totalorder %v327_v2, 256  ;;  %s488_s26 = sshll.u32 %s658_s0, 4  ;;  %s816_s26 = int_to_ptr.vmem [resolvable:$true] %s488_s26 }
  0x17   :  { %v326_v6 = vunpack.c.0.s8 %v325_v1  ;;  %v718_v15 = vld [vmem:[#allocation2 + $0x40] sm:$0xff]  ;;  %v57_v17 = vadd.f32 %v714_v13, %v708_v10  ;;  %v64_v18 = vadd.f32 %v716_v14, %v710_v11  ;;  %v724_v19 = vld [vmem:[#allocation2 + $0x48] sm:$0xff]  ;;  %v726_v20 = vld [vmem:[#allocation2 + $0x50] sm:$0xff]  ;;  %s582_s27 = scalar_lea.vmem %s816_s26, 128  ;;  %p587_p9 = scmp.lt.s32.totalorder %s816_s26, %s816_s26 }
  0x18   :  { %v44_v16 = vrot.slane %v43_v9, 4  ;;  %v728_v21 = vld [vmem:[#allocation2 + $0x58] sm:$0xff]  ;;  %v51_v22 = vrot.slane %v50_v12, 4  ;;  %v71_v24 = vadd.f32 %v726_v20, %v718_v15  ;;  %v736_v26 = vld [vmem:[#allocation2 + $0x60] sm:$0xff]  ;;  %v738_v27 = vld [vmem:[#allocation2 + $0x68] sm:$0xff]  ;;  %p583_p8 = scmp.ne.s32.totalorder %s816_s26, %s582_s27  ;;  %p588_p10 = scmp.lt.s32.totalorder %s582_s27, %s582_s27 }
  0x19   :  { %v730_v23 = vsub.s32 %v326_v6, %v328_v7  ;;  %v78_v25 = vadd.f32 %v728_v21, %v724_v19  ;;  %v740_v28 = vld [vmem:[#allocation2 + $0x70] sm:$0xff]  ;;  %v58_v30 = vrot.slane %v57_v17, 4  ;;  %v65_v31 = vrot.slane %v64_v18, 4  ;;  %v742_v32 = vld [vmem:[#allocation2 + $0x78] sm:$0xff] }
  0x1a   :  { %v45_v29 = vadd.f32 %v44_v16, %v43_v9  ;;  %v85_v33 = vadd.f32 %v740_v28, %v736_v26  ;;  %v52_v34 = vadd.f32 %v51_v22, %v50_v12  ;;  %v72_v35 = vrot.slane %v71_v24, 4  ;;  %p589_p11 = por %p588_p10, %p587_p9 }
  0x1b   :  { %v79_v36 = vrot.slane %v78_v25, 4  ;;  %v92_v37 = vadd.f32 %v742_v32, %v738_v27  ;;  %v59_v39 = vadd.f32 %v58_v30, %v57_v17  ;;  %v66_v40 = vadd.f32 %v65_v31, %v64_v18 }
  0x1c   :  { %v46_v38 = vrot.slane %v45_v29, 2  ;;  %v86_v41 = vrot.slane %v85_v33, 4  ;;  %v53_v42 = vrot.slane %v52_v34, 2  ;;  %v73_v43 = vadd.f32 %v72_v35, %v71_v24  ;;  %p590_p12 = pnand %p589_p11, %p583_p8 }
  0x1d   :  { %v80_v44 = vadd.f32 %v79_v36, %v78_v25  ;;  %v93_v45 = vrot.slane %v92_v37, 4  ;;  %v60_v47 = vrot.slane %v59_v39, 2  ;;  %v67_v48 = vrot.slane %v66_v40, 2 }
  0x1e   :  { %v47_v46 = vadd.f32 %v46_v38, %v45_v29  ;;  %v87_v49 = vadd.f32 %v86_v41, %v85_v33  ;;  %v54_v50 = vadd.f32 %v53_v42, %v52_v34  ;;  %v74_v51 = vrot.slane %v73_v43, 2 }
  0x1f   :  { %v81_v52 = vrot.slane %v80_v44, 2  ;;  %v94_v53 = vadd.f32 %v93_v45, %v92_v37  ;;  %v61_v55 = vadd.f32 %v60_v47, %v59_v39  ;;  %v68_v56 = vadd.f32 %v67_v48, %v66_v40 }
  0x20   :  { %v48_v54 = vrot.slane %v47_v46, 1  ;;  %v88_v57 = vrot.slane %v87_v49, 2  ;;  %v55_v58 = vrot.slane %v54_v50, 1  ;;  %v75_v59 = vadd.f32 %v74_v51, %v73_v43 }
  0x21   :  { %v82_v60 = vadd.f32 %v81_v52, %v80_v44  ;;  %v95_v61 = vrot.slane %v94_v53, 2  ;;  %v62_v0 = vrot.slane %v61_v55, 1  ;;  %v69_v1 = vrot.slane %v68_v56, 1 }
  0x22   :  { %v49_v62 = vadd.f32 %v48_v54, %v47_v46  ;;  %v89_v6 = vadd.f32 %v88_v57, %v87_v49  ;;  %v56_v7 = vadd.f32 %v55_v58, %v54_v50  ;;  %v76_v9 = vrot.slane %v75_v59, 1 }
  0x23   :  { %v83_v12 = vrot.slane %v82_v60, 1  ;;  %v96_v16 = vadd.f32 %v95_v61, %v94_v53  ;;  %v63_v18 = vadd.f32 %v62_v0, %v61_v55  ;;  %v70_v22 = vadd.f32 %v69_v1, %v68_v56 }
  0x24   :  { %v99_v17 = vmul.f32 0.0625, %v49_v62  ;;  %v90_v24 = vrot.slane %v89_v6, 1  ;;  %v100_v25 = vmul.f32 0.0625, %v56_v7  ;;  %v77_v29 = vadd.f32 %v76_v9, %v75_v59 }
  0x25   :  { %v84_v30 = vadd.f32 %v83_v12, %v82_v60  ;;  %v97_v31 = vrot.slane %v96_v16, 1  ;;  %v101_v33 = vmul.f32 0.0625, %v63_v18  ;;  %v102_v2 = vmul.f32 0.0625, %v70_v22 }
  0x26   :  { %v91_v34 = vadd.f32 %v90_v24, %v89_v6  ;;  %v753_v35 = vsub.f32 %v698_v3, %v99_v17  ;;  %v323_v36 = vcombine.low %v99_v17, %v100_v25  ;;  %v103_v37 = vmul.f32 0.0625, %v77_v29 }
  0x27   :  { %v104_v38 = vmul.f32 0.0625, %v84_v30  ;;  %v98_v39 = vadd.f32 %v97_v31, %v96_v16  ;;  %v338_v40 = vcombine.low %v101_v33, %v102_v2  ;;  %v758_v42 = vsub.f32 %v702_v5, %v99_v17 }
  0x28   :  { %v755_v41 = vmul.f32 0.0625, %v91_v34  ;;  %v123_v43 = vmul.f32 %v753_v35, %v753_v35  ;;  %v330_v44 = vrot.slane %v323_v36, %v730_v23  ;;  %v766_v3 = vsub.f32 %v700_v4, %v100_v25 }
  0x29   :  { %v353_v45 = vcombine.low %v103_v37, %v104_v38  ;;  %v763_v46 = vmul.f32 0.0625, %v98_v39  ;;  %v345_v47 = vrot.slane %v338_v40, %v730_v23  ;;  %v125_v48 = vmul.f32 %v758_v42, %v758_v42 }
  0x2a   :  { %v772_v49 = vsub.f32 %v704_v8, %v100_v25  ;;  %v775_v5 = vsub.f32 %v708_v10, %v101_v33  ;;  %v337_v50 = vrot.slane %v330_v44, %v730_v23  ;;  %v124_v4 = vmul.f32 %v766_v3, %v766_v3 }
  0x2b   :  { %v360_v51 = vrot.slane %v353_v45, %v730_v23  ;;  %v368_v52 = vcombine.low %v755_v41, %v763_v46  ;;  %v352_v53 = vrot.slane %v345_v47, %v730_v23  ;;  %v139_v54 = vadd.f32 %v125_v48, %v123_v43 }
  0x2c   :  { %v126_v8 = vmul.f32 %v772_v49, %v772_v49  ;;  %v787_v55 = vsub.f32 %v714_v13, %v101_v33  ;;  %391 = vst.msk [vmem:[#allocation6] sm:$0x3] %vm748_vm0, %v337_v50  ;;  %v127_v57 = vmul.f32 %v775_v5, %v775_v5  ;;  %v796_v58 = vsub.f32 %v710_v11, %v102_v2 }
  0x2d   :  { %v367_v10 = vrot.slane %v360_v51, %v730_v23  ;;  %v375_v56 = vrot.slane %v368_v52, %v730_v23  ;;  %392 = vst.msk [vmem:[#allocation6 + $0x2] sm:$0x3] %vm748_vm0, %v352_v53  ;;  %v140_v13 = vrot.slane %v139_v54, 4  ;;  %v803_v61 = vsub.f32 %v716_v14, %v102_v2 }
  0x2e   :  { %v146_v59 = vadd.f32 %v126_v8, %v124_v4  ;;  %v129_v60 = vmul.f32 %v787_v55, %v787_v55  ;;  %v128_v11 = vmul.f32 %v796_v58, %v796_v58  ;;  %v811_v0 = vsub.f32 %v718_v15, %v103_v37 }
  0x2f   :  { %393 = vst.msk [vmem:[#allocation6 + $0x4] sm:$0x3] %vm748_vm0, %v367_v10  ;;  %v382_v62 = vrot.slane %v375_v56, %v730_v23  ;;  %v814_v1 = vsub.f32 %v726_v20, %v103_v37  ;;  %v141_v14 = vadd.f32 %v140_v13, %v139_v54  ;;  %v130_v9 = vmul.f32 %v803_v61, %v803_v61 }
  0x30   :  { %v147_v6 = vrot.slane %v146_v59, 4  ;;  %v153_v7 = vadd.f32 %v129_v60, %v127_v57  ;;  %v131_v15 = vmul.f32 %v811_v0, %v811_v0  ;;  %v827_v12 = vsub.f32 %v724_v19, %v104_v38 }
  0x31   :  { %394 = vst.msk [vmem:[#allocation6 + $0x6] sm:$0x3] %vm748_vm0, %v382_v62  ;;  %v133_v20 = vmul.f32 %v814_v1, %v814_v1  ;;  %v830_v16 = vsub.f32 %v728_v21, %v104_v38  ;;  %v142_v17 = vrot.slane %v141_v14, 2  ;;  %v160_v24 = vadd.f32 %v130_v9, %v128_v11 }
  0x32   :  { %v148_v18 = vadd.f32 %v147_v6, %v146_v59  ;;  %v154_v22 = vrot.slane %v153_v7, 4 }
  0x33   :  { %593 = shalt.err (!%p590_p12)
}
  0x34   :  { %s594_s30 = scalar_lea.hbm %s991_s2, 128 }
  0x35   :  { %p595_p13 = scmp.ne.s32.totalorder %s991_s2, %s594_s30  ;;  %p598_p0 = scmp.lt.u32.totalorder %s594_s30, %s991_s2 }
  0x37   :  { %p600_p1 = pnand %p598_p0, %p595_p13 }
  0x39   :  { %603 = shalt.err (!%p600_p1)
}
  0x3a   :  { %s659_s8 = smov 32   ;;  %s660_s9 = smov 2   ;;  %v167_v19 = vadd.f32 %v133_v20, %v131_v15  ;;  %v132_v21 = vmul.f32 %v827_v12, %v827_v12  ;;  %v134_v25 = vmul.f32 %v830_v16, %v830_v16  ;;  %v858_v29 = vsub.f32 %v736_v26, %v755_v41 }
  0x3b   :  { %494 = dma.vmem_to_hbm [thread:$0]  %s816_s26, 128, %s991_s2, [#allocation7], %s659_s8, %s659_s8, %s660_s9   ;;  %v143_v30 = vadd.f32 %v142_v17, %v141_v14  ;;  %v149_v31 = vrot.slane %v148_v18, 2  ;;  %v155_v33 = vadd.f32 %v154_v22, %v153_v7  ;;  %v161_v2 = vrot.slane %v160_v24, 4 }
  0x3c   :  { %v168_v34 = vrot.slane %v167_v19, 4  ;;  %v174_v36 = vadd.f32 %v134_v25, %v132_v21  ;;  %v862_v37 = vsub.f32 %v740_v28, %v755_v41  ;;  %v135_v38 = vmul.f32 %v858_v29, %v858_v29  ;;  %s661_s2 = smov [#allocation8]  }
  0x3d   :  { %v144_v39 = vrot.slane %v143_v30, 1  ;;  %v150_v40 = vadd.f32 %v149_v31, %v148_v18  ;;  %v156_v43 = vrot.slane %v155_v33, 2  ;;  %v162_v44 = vadd.f32 %v161_v2, %v160_v24  ;;  %s500_s12 = sshll.u32 %s661_s2, 4  ;;  %s501_s12 = int_to_ptr.vmem [resolvable:$true] %s500_s12 }
  0x3e   :  { %v169_v45 = vadd.f32 %v168_v34, %v167_v19  ;;  %v175_v26 = vrot.slane %v174_v36, 4  ;;  %v137_v47 = vmul.f32 %v862_v37, %v862_v37  ;;  %v870_v48 = vsub.f32 %v738_v27, %v763_v46  ;;  %s604_s13 = scalar_lea.vmem %s501_s12, 128  ;;  %p609_p3 = scmp.lt.s32.totalorder %s501_s12, %s501_s12 }
  0x3f   :  { %v145_v50 = vadd.f32 %v144_v39, %v143_v30  ;;  %v151_v51 = vrot.slane %v150_v40, 1  ;;  %v157_v28 = vadd.f32 %v156_v43, %v155_v33  ;;  %v163_v41 = vrot.slane %v162_v44, 2  ;;  %p605_p2 = scmp.ne.s32.totalorder %s501_s12, %s604_s13  ;;  %p610_p4 = scmp.lt.s32.totalorder %s604_s13, %s604_s13 }
  0x40   :  { %v170_v52 = vrot.slane %v169_v45, 2  ;;  %v176_v4 = vadd.f32 %v175_v26, %v174_v36  ;;  %v181_v53 = vadd.f32 %v137_v47, %v135_v38  ;;  %v874_v54 = vsub.f32 %v742_v32, %v763_v46 }
  0x41   :  { %v195_v8 = vmul.f32 0.06666667, %v145_v50  ;;  %v152_v10 = vadd.f32 %v151_v51, %v150_v40  ;;  %v158_v56 = vrot.slane %v157_v28, 1  ;;  %v164_v57 = vadd.f32 %v163_v41, %v162_v44  ;;  %p611_p5 = por %p610_p4, %p609_p3 }
  0x42   :  { %v171_v13 = vadd.f32 %v170_v52, %v169_v45  ;;  %v177_v59 = vrot.slane %v176_v4, 2  ;;  %v182_v60 = vrot.slane %v181_v53, 4  ;;  %v136_v27 = vmul.f32 %v870_v48, %v870_v48 }
  0x43   :  { %528 = vrsqrt.f32 %v195_v8  ;;  %v196_v62 = vmul.f32 0.06666667, %v152_v10  ;;  %v159_v11 = vadd.f32 %v158_v56, %v157_v28  ;;  %v165_v14 = vrot.slane %v164_v57, 1  ;;  %p612_p6 = pnand %p611_p5, %p605_p2 }
  0x44   :  { %v172_v6 = vrot.slane %v171_v13, 1  ;;  %v178_v7 = vadd.f32 %v177_v59, %v176_v4  ;;  %v183_v9 = vadd.f32 %v182_v60, %v181_v53  ;;  %v138_v32 = vmul.f32 %v874_v54, %v874_v54 }
  0x45   :  { %530 = vrsqrt.f32 %v196_v62  ;;  %v197_v46 = vmul.f32 0.06666667, %v159_v11  ;;  %v166_v15 = vadd.f32 %v165_v14, %v164_v57  ;;  %vm205_vm1 = vcmp.eq.f32.partialorder %v195_v8, inf }
  0x46   :  { %v173_v20 = vadd.f32 %v172_v6, %v171_v13  ;;  %v179_v17 = vrot.slane %v178_v7, 1  ;;  %v184_v18 = vrot.slane %v183_v9, 2  ;;  %v188_v22 = vadd.f32 %v138_v32, %v136_v27 }
  0x47   :  { %532 = vrsqrt.f32 %v197_v46  ;;  %v880_v24 = vmul.f32 0.06666667, %v166_v15  ;;  %vm207_vm2 = vcmp.eq.f32.partialorder %v195_v8, 0.0  ;;  %v208_v33 = vand.u32 2147483648, %v195_v8 }
  0x48   :  { %v882_v19 = vmul.f32 0.06666667, %v173_v20  ;;  %v180_v21 = vadd.f32 %v179_v17, %v178_v7  ;;  %v185_v25 = vadd.f32 %v184_v18, %v183_v9  ;;  %v189_v30 = vrot.slane %v188_v22, 4 }
  0x49   :  { %534 = vrsqrt.f32 %v880_v24  ;;  %vm212_vm3 = vcmp.eq.f32.partialorder %v196_v62, inf  ;;  %vm214_vm4 = vcmp.eq.f32.partialorder %v196_v62, 0.0  ;;  %v215_v43 = vand.u32 2147483648, %v196_v62 }
  0x4a   :  { %536 = vrsqrt.f32 %v882_v19  ;;  %v886_v34 = vmul.f32 0.06666667, %v180_v21  ;;  %v186_v36 = vrot.slane %v185_v25, 1  ;;  %v190_v38 = vadd.f32 %v189_v30, %v188_v22 }
  0x4b   :  { %vm219_vm5 = vcmp.eq.f32.partialorder %v197_v46, inf  ;;  %vm221_vm6 = vcmp.eq.f32.partialorder %v197_v46, 0.0  ;;  %v222_v50 = vand.u32 2147483648, %v197_v46  ;;  %vm226_vm7 = vcmp.eq.f32.partialorder %v880_v24, inf }
  0x4c   :  { %538 = vrsqrt.f32 %v886_v34  ;;  %v187_v26 = vadd.f32 %v186_v36, %v185_v25  ;;  %v191_v51 = vrot.slane %v190_v38, 2  ;;  %vm228_vm8 = vcmp.eq.f32.partialorder %v880_v24, 0.0 }
  0x4d   :  { %v529_v31 = vpop.eup %528  ;;  %v229_v56 = vand.u32 2147483648, %v880_v24  ;;  %vm233_vm9 = vcmp.eq.f32.partialorder %v882_v19, inf  ;;  %vm235_vm10 = vcmp.eq.f32.partialorder %v882_v19, 0.0  ;;  %v236_v14 = vand.u32 2147483648, %v882_v19 }
  0x4e   :  { %v204_v2 = vmul.f32 %v529_v31, %v195_v8  ;;  %v891_v52 = vmul.f32 0.06666667, %v187_v26  ;;  %vm240_vm11 = vcmp.eq.f32.partialorder %v886_v34, inf  ;;  %vm242_vm12 = vcmp.eq.f32.partialorder %v886_v34, 0.0 }
  0x4f   :  { %v531_v39 = vpop.eup %530 }
  0x50   :  { %v206_v40 = vsel %vm205_vm1, %v195_v8, %v204_v2  ;;  %v211_v45 = vmul.f32 %v531_v39, %v196_v62  ;;  %v192_v8 = vadd.f32 %v191_v51, %v190_v38  ;;  %vm247_vm13 = vcmp.eq.f32.partialorder %v891_v52, inf }
  0x51   :  { %v209_v44 = vsel %vm207_vm2, %v208_v33, %v206_v40  ;;  %v533_v28 = vpop.eup %532  ;;  %vm249_vm14 = vcmp.eq.f32.partialorder %v891_v52, 0.0 }
  0x52   :  { %v259_v47 = vadd.f32 1e-06, %v209_v44  ;;  %v213_v41 = vsel %vm212_vm3, %v196_v62, %v211_v45  ;;  %v218_v53 = vmul.f32 %v533_v28, %v197_v46  ;;  %v193_v59 = vrot.slane %v192_v8, 1 }
  0x53   :  { %v216_v4 = vsel %vm214_vm4, %v215_v43, %v213_v41  ;;  %v535_v57 = vpop.eup %534 }
  0x54   :  { %540 = vrcp.f32 %v259_v47  ;;  %v260_v10 = vadd.f32 1e-06, %v216_v4  ;;  %v220_v13 = vsel %vm219_vm5, %v197_v46, %v218_v53  ;;  %v403_v60 = vcombine.low %v209_v44, %v216_v4  ;;  %v537_v27 = vpop.eup %536 }
  0x55   :  { %542 = vrsqrt.f32 %v891_v52  ;;  %v223_v62 = vsel %vm221_vm6, %v222_v50, %v220_v13  ;;  %v225_v11 = vmul.f32 %v535_v57, %v880_v24  ;;  %v232_v7 = vmul.f32 %v537_v27, %v882_v19 }
  0x56   :  { %544 = vrcp.f32 %v260_v10  ;;  %v261_v6 = vadd.f32 1e-06, %v223_v62  ;;  %v194_v9 = vadd.f32 %v193_v59, %v192_v8  ;;  %v410_v32 = vrot.slane %v403_v60, %v730_v23  ;;  %v539_v20 = vpop.eup %538 }
  0x57   :  { %v227_v15 = vsel %vm226_vm7, %v880_v24, %v225_v11  ;;  %v243_v46 = vand.u32 2147483648, %v886_v34  ;;  %v234_v18 = vsel %vm233_vm9, %v882_v19, %v232_v7  ;;  %v239_v30 = vmul.f32 %v539_v20, %v886_v34 }
  0x58   :  { %546 = vrcp.f32 %v261_v6  ;;  %v230_v17 = vsel %vm228_vm8, %v229_v56, %v227_v15  ;;  %v202_v22 = vmul.f32 0.06666667, %v194_v9  ;;  %v237_v25 = vsel %vm235_vm10, %v236_v14, %v234_v18 }
  0x59   :  { %v262_v21 = vadd.f32 1e-06, %v230_v17  ;;  %v417_v31 = vrot.slane %v410_v32, %v730_v23  ;;  %v263_v33 = vadd.f32 1e-06, %v237_v25  ;;  %v241_v2 = vsel %vm240_vm11, %v886_v34, %v239_v30 }
  0x5a   :  { %548 = vrsqrt.f32 %v202_v22  ;;  %v418_v24 = vcombine.low %v223_v62, %v230_v17  ;;  %v244_v38 = vsel %vm242_vm12, %v243_v46, %v241_v2  ;;  %v250_v19 = vand.u32 2147483648, %v891_v52 }
  0x5b   :  { %550 = vrcp.f32 %v262_v21  ;;  %467 = vst.msk [vmem:[#allocation8] sm:$0x3] %vm748_vm0, %v417_v31  ;;  %v264_v44 = vadd.f32 1e-06, %v244_v38  ;;  %v433_v47 = vcombine.low %v237_v25, %v244_v38  ;;  %vm254_vm15 = vcmp.eq.f32.partialorder %v202_v22, inf }
  0x5c   :  { %552 = vrcp.f32 %v263_v33  ;;  %v425_v45 = vrot.slane %v418_v24, %v730_v23  ;;  %vm256_vm1 = vcmp.eq.f32.partialorder %v202_v22, 0.0 }
  0x5d   :  { %554 = vrcp.f32 %v264_v44  ;;  %v440_v28 = vrot.slane %v433_v47, %v730_v23 }
  0x5e   :  { %v541_v36 = vpop.eup %540  ;;  %v432_v34 = vrot.slane %v425_v45, %v730_v23 }
  0x5f   :  { %v543_v39 = vpop.eup %542  ;;  %v283_v40 = vmul.f32 %v541_v36, %v753_v35  ;;  %v285_v43 = vmul.f32 %v541_v36, %v758_v42  ;;  %v447_v8 = vrot.slane %v440_v28, %v730_v23 }
  0x60   :  { %v246_v26 = vmul.f32 %v543_v39, %v891_v52  ;;  %v545_v50 = vpop.eup %544  ;;  %468 = vst.msk [vmem:[#allocation8 + $0x2] sm:$0x3] %vm748_vm0, %v432_v34 }
  0x61   :  { %299 = vst [vmem:[#allocation5] sm:$0xff] %v283_v40  ;;  %301 = vst [vmem:[#allocation5 + $0x10] sm:$0xff] %v285_v43  ;;  %v284_v51 = vmul.f32 %v545_v50, %v766_v3  ;;  %v286_v35 = vmul.f32 %v545_v50, %v772_v49 }
  0x62   :  { %v248_v42 = vsel %vm247_vm13, %v891_v52, %v246_v26  ;;  %v547_v4 = vpop.eup %546  ;;  %v257_v52 = vand.u32 2147483648, %v202_v22  ;;  %469 = vst.msk [vmem:[#allocation8 + $0x4] sm:$0x3] %vm748_vm0, %v447_v8 }
  0x63   :  { %v251_v41 = vsel %vm249_vm14, %v250_v19, %v248_v42  ;;  %300 = vst [vmem:[#allocation5 + $0x8] sm:$0xff] %v284_v51  ;;  %302 = vst [vmem:[#allocation5 + $0x18] sm:$0xff] %v286_v35  ;;  %v287_v3 = vmul.f32 %v547_v4, %v775_v5  ;;  %v289_v49 = vmul.f32 %v547_v4, %v787_v55 }
  0x64   :  { %v265_v53 = vadd.f32 1e-06, %v251_v41  ;;  %v549_v10 = vpop.eup %548 }
  0x65   :  { %v551_v56 = vpop.eup %550  ;;  %303 = vst [vmem:[#allocation5 + $0x20] sm:$0xff] %v287_v3  ;;  %305 = vst [vmem:[#allocation5 + $0x30] sm:$0xff] %v289_v49  ;;  %v253_v57 = vmul.f32 %v549_v10, %v202_v22 }
  0x66   :  { %556 = vrcp.f32 %v265_v53  ;;  %v553_v13 = vpop.eup %552  ;;  %v288_v59 = vmul.f32 %v551_v56, %v796_v58  ;;  %v290_v60 = vmul.f32 %v551_v56, %v803_v61 }
  0x67   :  { %v291_v5 = vmul.f32 %v553_v13, %v811_v0  ;;  %v293_v55 = vmul.f32 %v553_v13, %v814_v1  ;;  %v255_v27 = vsel %vm254_vm15, %v202_v22, %v253_v57  ;;  %v555_v11 = vpop.eup %554 }
  0x68   :  { %304 = vst [vmem:[#allocation5 + $0x28] sm:$0xff] %v288_v59  ;;  %306 = vst [vmem:[#allocation5 + $0x38] sm:$0xff] %v290_v60  ;;  %v258_v62 = vsel %vm256_vm1, %v257_v52, %v255_v27  ;;  %v292_v7 = vmul.f32 %v555_v11, %v827_v12  ;;  %v294_v9 = vmul.f32 %v555_v11, %v830_v16 }
  0x69   :  { %307 = vst [vmem:[#allocation5 + $0x40] sm:$0xff] %v291_v5  ;;  %309 = vst [vmem:[#allocation5 + $0x50] sm:$0xff] %v293_v55  ;;  %v266_v14 = vadd.f32 1e-06, %v258_v62  ;;  %v448_v6 = vcombine.low %v251_v41, %v258_v62 }
  0x6a   :  { %308 = vst [vmem:[#allocation5 + $0x48] sm:$0xff] %v292_v7  ;;  %310 = vst [vmem:[#allocation5 + $0x58] sm:$0xff] %v294_v9 }
  0x6b   :  { %558 = vrcp.f32 %v266_v14  ;;  %v455_v58 = vrot.slane %v448_v6, %v730_v23 }
  0x6d   :  { %v462_v61 = vrot.slane %v455_v58, %v730_v23 }
  0x6f   :  { %470 = vst.msk [vmem:[#allocation8 + $0x6] sm:$0x3] %vm748_vm0, %v462_v61 }
  0x70   :  { %v557_v0 = vpop.eup %556 }
  0x71   :  { %v295_v1 = vmul.f32 %v557_v0, %v858_v29  ;;  %v297_v32 = vmul.f32 %v557_v0, %v862_v37 }
  0x72   :  { %615 = shalt.err (!%p612_p6)
}
  0x73   :  { %s616_s16 = scalar_lea.hbm %s992_s3, 128 }
  0x74   :  { %p617_p7 = scmp.ne.s32.totalorder %s992_s3, %s616_s16  ;;  %p620_p8 = scmp.lt.u32.totalorder %s616_s16, %s992_s3 }
  0x76   :  { %p622_p9 = pnand %p620_p8, %p617_p7 }
  0x78   :  { %625 = shalt.err (!%p622_p9)
}
  0x79   :  { %506 = dma.vmem_to_hbm [thread:$0]  %s501_s12, 128, %s992_s3, [#allocation7], %s659_s8, %s659_s8, %s660_s9   ;;  %311 = vst [vmem:[#allocation5 + $0x60] sm:$0xff] %v295_v1  ;;  %313 = vst [vmem:[#allocation5 + $0x70] sm:$0xff] %v297_v32  ;;  %v559_v23 = vpop.eup %558 }
  0x7a   :  { %s662_s25 = smov [#allocation5]   ;;  %v296_v63 = vmul.f32 %v559_v23, %v870_v48  ;;  %v298_v12 = vmul.f32 %v559_v23, %v874_v54 }
  0x7b   :  { %s476_s0 = sshll.u32 %s662_s25, 4  ;;  %s477_s0 = int_to_ptr.vmem [resolvable:$true] %s476_s0 }
  0x7c   :  { %312 = vst [vmem:[#allocation5 + $0x68] sm:$0xff] %v296_v63  ;;  %314 = vst [vmem:[#allocation5 + $0x78] sm:$0xff] %v298_v12  ;;  %s626_s26 = scalar_lea.vmem %s477_s0, 2048  ;;  %p631_p11 = scmp.lt.s32.totalorder %s477_s0, %s477_s0 }
  0x7d   :  { %p627_p10 = scmp.ne.s32.totalorder %s477_s0, %s626_s26  ;;  %p632_p12 = scmp.lt.s32.totalorder %s626_s26, %s626_s26 }
  0x7f   :  { %p633_p13 = por %p632_p12, %p631_p11 }
  0x81   :  { %p634_p0 = pnand %p633_p13, %p627_p10 }
  0x83   :  { %637 = shalt.err (!%p634_p0)
}
  0x84   :  { %s638_s28 = scalar_lea.hbm %s990_s1, 2048 }
  0x85   :  { %p639_p1 = scmp.ne.s32.totalorder %s990_s1, %s638_s28  ;;  %p642_p2 = scmp.lt.u32.totalorder %s638_s28, %s990_s1 }
  0x87   :  { %p644_p3 = pnand %p642_p2, %p639_p1 }
  0x89   :  { %647 = shalt.err (!%p644_p3)
}
  0x8a   :  { %482 = dma.vmem_to_hbm [thread:$0]  %s477_s0, 2048, %s990_s1, [#allocation4], %s655_s22, %s655_s22, %s656_s23  }
  0x8b   :  { %650 = dma.done.wait [#allocation4], 2048  }
  0x8c   :  { %651 = vsyncadd [#allocation4], 4294965248 }
  0x8d   :  { %652 = dma.done.wait [#allocation7], 256  }
  0x8e   :  { %653 = vsyncadd [#allocation7], 4294967040 }
  0x8f   :  { %516 = vsyncpa [#allocation3], 1 }
  0x90   :  { %517 = vsyncpa [#allocation4], 1 }
  0x91   :  { %518 = vsyncpa [#allocation7], 1 }

</bundles_post_ra>
